<compile_context>
chip_gen: v5e
topology: v5e:2x2
jax: 0.10.0
libtpu: 0.0.40
codegen_flags: <defaults>
</compile_context>

<pallas_src>
import functools

import jax
import jax.numpy as jnp
from jax.experimental import pallas as pl
from jax.experimental.pallas import tpu as pltpu


def gcn_rowtiled_kernel(x_ref, adj_ref, w1t_ref, w2t_ref, wlt_ref, b_ref,
                        o_ref, xw1_ref, h1_ref, dcol_ref):
    """One row-tile of adj per grid step; finalize on the last step."""
    i = pl.program_id(0)
    tm = adj_ref.shape[0]

    @pl.when(i == 0)
    def _init():
        # x W1^T computed once, kept resident in VMEM as bf16 (bf16 MXU path
        # for the dominant adj @ xw1 matmul).
        xw1_ref[...] = jnp.dot(
            x_ref[...], w1t_ref[...],
            preferred_element_type=jnp.float32).astype(xw1_ref.dtype)
        dcol_ref[...] = jnp.zeros_like(dcol_ref)

    adj_t = adj_ref[...]                                        # [tm, N] bf16

    # gcn1 tile: ReLU(adj_t @ (x W1^T))   (bf16 x bf16 -> f32 accumulation)
    h1_t = jnp.dot(adj_t, xw1_ref[...], preferred_element_type=jnp.float32)
    h1_t = jnp.maximum(h1_t, 0.0)
    # acvt: ReLU done; TODO(synk): nn.Dropout(0.5) treated as identity (eval).
    row0 = pl.multiple_of(i * tm, tm)
    h1_ref[pl.ds(row0, tm), :] = h1_t                           # keep h1 rows

    # partial column-sum of adj (for sum_rows(adj @ z) == colsum(adj) @ z)
    dcol_ref[...] += jnp.sum(adj_t.astype(jnp.float32), axis=0, keepdims=True)

    @pl.when(i == pl.num_programs(0) - 1)
    def _finalize():
        # s = (colsum(adj) @ h1) @ W2^T ; out = s @ Wl^T + b
        dh = jnp.dot(dcol_ref[...], h1_ref[...],
                     preferred_element_type=jnp.float32)        # [1, nhid]
        s = jnp.dot(dh, w2t_ref[...],
                    preferred_element_type=jnp.float32)         # [1, nclass]
        o_ref[...] = (jnp.dot(s, wlt_ref[...],
                              preferred_element_type=jnp.float32)
                      + b_ref[...])


def gcn_forward(params, x, adj, *, tm=128):
    """Whole GCN forward in one row-tiled Pallas kernel. Returns [nclass]."""
    N, nfeat = x.shape
    nhid = params["w1t"].shape[1]
    nclass = params["w2t"].shape[1]

    tm = min(tm, N)
    # TODO(synk): pad / ragged last tile for N not divisible by tm.
    assert N % tm == 0 and tm % 8 == 0, "demo assumes N % tm == 0, tm % 8 == 0"
    grid = (N // tm,)

    # bf16 inputs for the adj stream and the x@W1 matmul; f32 accumulation in
    # the kernel.  adj is {0,1} so bf16 is lossless for it.
    x_bf = x.astype(jnp.bfloat16)
    adj_bf = adj.astype(jnp.bfloat16)
    w1t_bf = params["w1t"].astype(jnp.bfloat16)
    w2t = params["w2t"].astype(jnp.float32)
    wlt = params["wlt"].astype(jnp.float32)
    b_lin = params["b_lin"].astype(jnp.float32)

    flops = (2 * N * nfeat * nhid          # x @ W1
             + 2 * N * N * nhid            # adj @ xw1 (dominant)
             + 2 * N * nhid                # colsum(adj) @ h1
             + 2 * nhid * nclass + 2 * nclass * nclass)
    bytes_accessed = (N * N * 2 + N * nfeat * 2 + nfeat * nhid * 2
                      + nhid * nclass * 4 + nclass * nclass * 4
                      + nclass * 4 + nclass * 4)

    out = pl.pallas_call(
        gcn_rowtiled_kernel,
        out_shape=jax.ShapeDtypeStruct((1, nclass), jnp.float32),
        grid_spec=pltpu.PrefetchScalarGridSpec(
            num_scalar_prefetch=0,
            grid=grid,
            in_specs=[
                pl.BlockSpec((N, nfeat), lambda i: (0, 0)),        # x (resident)
                pl.BlockSpec((tm, N), lambda i: (i, 0)),           # adj row tile
                pl.BlockSpec((nfeat, nhid), lambda i: (0, 0)),     # gcn1 W^T
                pl.BlockSpec((nhid, nclass), lambda i: (0, 0)),    # gcn2 W^T
                pl.BlockSpec((nclass, nclass), lambda i: (0, 0)),  # linear W^T
                pl.BlockSpec((1, nclass), lambda i: (0, 0)),       # linear bias
            ],
            out_specs=pl.BlockSpec((1, nclass), lambda i: (0, 0)),
            scratch_shapes=[
                pltpu.VMEM((N, nhid), jnp.bfloat16),   # xw1 = x @ W1^T
                pltpu.VMEM((N, nhid), jnp.float32),    # h1 rows (ReLU'd)
                pltpu.VMEM((1, N), jnp.float32),       # colsum(adj) accumulator
            ]),
        compiler_params=pltpu.CompilerParams(
            dimension_semantics=("arbitrary",),
            vmem_limit_bytes=32 * 1024 * 1024),
        cost_estimate=pl.CostEstimate(flops=flops, transcendentals=0,
                                      bytes_accessed=bytes_accessed),
    )(x_bf, adj_bf, w1t_bf, w2t, wlt, b_lin)
    return out[0]


def init_params(key, nfeat, nhid, nclass):
    """Deterministic synthetic params, PyTorch nn.Linear-style uniform init."""
    keys = jax.random.split(key, 4)

    def u(k, shape, fan_in):
        bound = 1.0 / float(fan_in) ** 0.5
        return jax.random.uniform(k, shape, jnp.float32, -bound, bound)

    return {
        "w1t": u(keys[0], (nfeat, nhid), nfeat),      # gcn1.linear.weight^T (no bias)
        "w2t": u(keys[1], (nhid, nclass), nhid),      # gcn2.linear.weight^T (no bias)
        "wlt": u(keys[2], (nclass, nclass), nclass),  # linear.weight^T
        "b_lin": u(keys[3], (1, nclass), nclass),     # linear.bias
    }


if __name__ == "__main__":
    N, NFEAT, NHID, NCLASS = 256, 128, 32, 8
    TM = 128   # 2 row tiles -> exercises the pipelined grid + accumulators

    key = jax.random.PRNGKey(0)
    kx, kadj, kp = jax.random.split(key, 3)
    x = jax.random.normal(kx, (N, NFEAT), dtype=jnp.float32)
    # symmetric binary adjacency with self-loops (float, as in the reference)
    a = (jax.random.uniform(kadj, (N, N)) > 0.9).astype(jnp.float32)
    adj = jnp.clip(a + a.T + jnp.eye(N, dtype=jnp.float32), 0.0, 1.0)
    params = init_params(kp, NFEAT, NHID, NCLASS)

    fwd = jax.jit(functools.partial(gcn_forward, params, tm=TM))
    y = fwd(x, adj)
    jax.block_until_ready(y)

    # pure-JAX f32 reference of the original module's forward
    h1 = jnp.maximum(adj @ (x @ params["w1t"]), 0.0)
    h2 = adj @ (h1 @ params["w2t"])
    y_ref = jnp.sum(h2, axis=0) @ params["wlt"] + params["b_lin"][0]

    assert y.shape == (NCLASS,) and y.dtype == jnp.float32
    # bf16 inputs -> not bit-exact vs the f32 reference; relative tolerance.
    atol = 2e-2 * float(jnp.max(jnp.abs(y_ref)))
    assert jnp.allclose(y, y_ref, rtol=2e-2, atol=atol), (y, y_ref)
    print("KERNEL_OK")
</pallas_src>

<mosaic_0001>
module attributes {stable_mosaic.version = 11 : i64} {
  func.func @gcn_rowtiled_kernel(%arg0: i32, %arg1: memref<256x128xbf16, #tpu.memory_space<vmem>>, %arg2: memref<128x256xbf16, #tpu.memory_space<vmem>>, %arg3: memref<128x32xbf16, #tpu.memory_space<vmem>>, %arg4: memref<32x8xf32, #tpu.memory_space<vmem>>, %arg5: memref<8x8xf32, #tpu.memory_space<vmem>>, %arg6: memref<1x8xf32, #tpu.memory_space<vmem>>, %arg7: memref<1x8xf32, #tpu.memory_space<vmem>>, %arg8: memref<256x32xbf16, #tpu.memory_space<vmem>>, %arg9: memref<256x32xf32, #tpu.memory_space<vmem>>, %arg10: memref<1x256xf32, #tpu.memory_space<vmem>>) attributes {dimension_semantics = [#tpu.dimension_semantics<arbitrary>], iteration_bounds = array<i64: 2>, scalar_prefetch = 0 : i64, scratch_operands = 3 : i64, tpu.core_type = #tpu.core_type<tc>, window_params = [{pipeline_mode = #tpu.pipeline_mode<synchronous>, transform_indices = @transform_0, window_bounds = array<i64: 256, 128>}, {transform_indices = @transform_1, window_bounds = array<i64: 128, 256>}, {pipeline_mode = #tpu.pipeline_mode<synchronous>, transform_indices = @transform_2, window_bounds = array<i64: 128, 32>}, {pipeline_mode = #tpu.pipeline_mode<synchronous>, transform_indices = @transform_3, window_bounds = array<i64: 32, 8>}, {pipeline_mode = #tpu.pipeline_mode<synchronous>, transform_indices = @transform_4, window_bounds = array<i64: 8, 8>}, {pipeline_mode = #tpu.pipeline_mode<synchronous>, transform_indices = @transform_5, window_bounds = array<i64: 1, 8>}, {pipeline_mode = #tpu.pipeline_mode<synchronous>, transform_indices = @transform_6, window_bounds = array<i64: 1, 8>}]} {
    %c0_i32 = arith.constant 0 : i32
    %0 = arith.cmpi eq, %arg0, %c0_i32 : i32
    %1 = arith.extui %0 : i1 to i32
    %c0_i32_0 = arith.constant 0 : i32
    %2 = arith.cmpi ne, %1, %c0_i32_0 : i32
    scf.if %2 {
      %c0_12 = arith.constant 0 : index
      %c0_13 = arith.constant 0 : index
      %21 = vector.load %arg1[%c0_12, %c0_13] : memref<256x128xbf16, #tpu.memory_space<vmem>>, vector<256x128xbf16>
      %c0_14 = arith.constant 0 : index
      %c0_15 = arith.constant 0 : index
      %22 = vector.load %arg3[%c0_14, %c0_15] : memref<128x32xbf16, #tpu.memory_space<vmem>>, vector<128x32xbf16>
      %cst_16 = arith.constant dense<0.000000e+00> : vector<256x32xf32>
      %23 = tpu.matmul %21, %22, %cst_16 {dimension_numbers = #tpu.dot_dimension_numbers<[1], [0], [0], [1], [0, 0, 1, 1], [], []>} : vector<256x128xbf16>, vector<128x32xbf16>, vector<256x32xf32> -> vector<256x32xf32>
      %24 = arith.truncf %23 : vector<256x32xf32> to vector<256x32xbf16>
      %c0_17 = arith.constant 0 : index
      %c0_18 = arith.constant 0 : index
      %25 = vector.load %arg8[%c0_17, %c0_18] : memref<256x32xbf16, #tpu.memory_space<vmem>>, vector<256x32xbf16>
      tpu.vector_store %arg8[%c0_17, %c0_18], %24 {strides = array<i32>} : memref<256x32xbf16, #tpu.memory_space<vmem>>, vector<256x32xbf16>,
      %cst_19 = arith.constant 0.000000e+00 : f32
      %26 = vector.broadcast %cst_19 : f32 to vector<1x256xf32>
      %c0_20 = arith.constant 0 : index
      %c0_21 = arith.constant 0 : index
      %27 = vector.load %arg10[%c0_20, %c0_21] : memref<1x256xf32, #tpu.memory_space<vmem>>, vector<1x256xf32>
      tpu.vector_store %arg10[%c0_20, %c0_21], %26 {strides = array<i32>} : memref<1x256xf32, #tpu.memory_space<vmem>>, vector<1x256xf32>,
    } else {
    }
    %c0 = arith.constant 0 : index
    %c0_1 = arith.constant 0 : index
    %3 = vector.load %arg2[%c0, %c0_1] : memref<128x256xbf16, #tpu.memory_space<vmem>>, vector<128x256xbf16>
    %c0_2 = arith.constant 0 : index
    %c0_3 = arith.constant 0 : index
    %4 = vector.load %arg8[%c0_2, %c0_3] : memref<256x32xbf16, #tpu.memory_space<vmem>>, vector<256x32xbf16>
    %cst = arith.constant dense<0.000000e+00> : vector<128x32xf32>
    %5 = tpu.matmul %3, %4, %cst {dimension_numbers = #tpu.dot_dimension_numbers<[1], [0], [0], [1], [0, 0, 1, 1], [], []>} : vector<128x256xbf16>, vector<256x32xbf16>, vector<128x32xf32> -> vector<128x32xf32>
    %cst_4 = arith.constant 0.000000e+00 : f32
    %6 = vector.broadcast %cst_4 : f32 to vector<128x32xf32>
    %7 = arith.maximumf %5, %6 : vector<128x32xf32>
    %c128_i32 = arith.constant 128 : i32
    %8 = arith.muli %arg0, %c128_i32 : i32
    %9 = tpu.assume_multiple %8, 128 : i32
    %10 = arith.index_cast %9 : i32 to index
    %c0_5 = arith.constant 0 : index
    %11 = vector.load %arg9[%10, %c0_5] : memref<256x32xf32, #tpu.memory_space<vmem>>, vector<128x32xf32>
    tpu.vector_store %arg9[%10, %c0_5], %7 {strides = array<i32>} : memref<256x32xf32, #tpu.memory_space<vmem>>, vector<128x32xf32>,
    %c0_6 = arith.constant 0 : index
    %c0_7 = arith.constant 0 : index
    %12 = vector.load %arg10[%c0_6, %c0_7] : memref<1x256xf32, #tpu.memory_space<vmem>>, vector<1x256xf32>
    %13 = arith.extf %3 : vector<128x256xbf16> to vector<128x256xf32>
    %cst_8 = arith.constant dense<0.000000e+00> : vector<256xf32>
    %14 = vector.multi_reduction <add>, %13, %cst_8 [0] : vector<128x256xf32> to vector<256xf32>
    %15 = vector.shape_cast %14 : vector<256xf32> to vector<1x256xf32>
    %16 = arith.addf %12, %15 : vector<1x256xf32>
    %c0_9 = arith.constant 0 : index
    %c0_10 = arith.constant 0 : index
    %17 = vector.load %arg10[%c0_9, %c0_10] : memref<1x256xf32, #tpu.memory_space<vmem>>, vector<1x256xf32>
    tpu.vector_store %arg10[%c0_9, %c0_10], %16 {strides = array<i32>} : memref<1x256xf32, #tpu.memory_space<vmem>>, vector<1x256xf32>,
    %c1_i32 = arith.constant 1 : i32
    %18 = arith.cmpi eq, %arg0, %c1_i32 : i32
    %19 = arith.extui %18 : i1 to i32
    %c0_i32_11 = arith.constant 0 : i32
    %20 = arith.cmpi ne, %19, %c0_i32_11 : i32
    scf.if %20 {
      %c0_12 = arith.constant 0 : index
      %c0_13 = arith.constant 0 : index
      %21 = vector.load %arg10[%c0_12, %c0_13] : memref<1x256xf32, #tpu.memory_space<vmem>>, vector<1x256xf32>
      %c0_14 = arith.constant 0 : index
      %c0_15 = arith.constant 0 : index
      %22 = vector.load %arg9[%c0_14, %c0_15] : memref<256x32xf32, #tpu.memory_space<vmem>>, vector<256x32xf32>
      %cst_16 = arith.constant dense<0.000000e+00> : vector<1x32xf32>
      %23 = tpu.matmul %21, %22, %cst_16 {dimension_numbers = #tpu.dot_dimension_numbers<[1], [0], [0], [1], [0, 0, 1, 1], [], []>} : vector<1x256xf32>, vector<256x32xf32>, vector<1x32xf32> -> vector<1x32xf32>
      %c0_17 = arith.constant 0 : index
      %c0_18 = arith.constant 0 : index
      %24 = vector.load %arg4[%c0_17, %c0_18] : memref<32x8xf32, #tpu.memory_space<vmem>>, vector<32x8xf32>
      %cst_19 = arith.constant dense<0.000000e+00> : vector<1x8xf32>
      %25 = tpu.matmul %23, %24, %cst_19 {dimension_numbers = #tpu.dot_dimension_numbers<[1], [0], [0], [1], [0, 0, 1, 1], [], []>} : vector<1x32xf32>, vector<32x8xf32>, vector<1x8xf32> -> vector<1x8xf32>
      %c0_20 = arith.constant 0 : index
      %c0_21 = arith.constant 0 : index
      %26 = vector.load %arg5[%c0_20, %c0_21] : memref<8x8xf32, #tpu.memory_space<vmem>>, vector<8x8xf32>
      %cst_22 = arith.constant dense<0.000000e+00> : vector<1x8xf32>
      %27 = tpu.matmul %25, %26, %cst_22 {dimension_numbers = #tpu.dot_dimension_numbers<[1], [0], [0], [1], [0, 0, 1, 1], [], []>} : vector<1x8xf32>, vector<8x8xf32>, vector<1x8xf32> -> vector<1x8xf32>
      %c0_23 = arith.constant 0 : index
      %c0_24 = arith.constant 0 : index
      %28 = vector.load %arg6[%c0_23, %c0_24] : memref<1x8xf32, #tpu.memory_space<vmem>>, vector<1x8xf32>
      %29 = arith.addf %27, %28 : vector<1x8xf32>
      %c0_25 = arith.constant 0 : index
      %c0_26 = arith.constant 0 : index
      %30 = vector.load %arg7[%c0_25, %c0_26] : memref<1x8xf32, #tpu.memory_space<vmem>>, vector<1x8xf32>
      tpu.vector_store %arg7[%c0_25, %c0_26], %29 {strides = array<i32>} : memref<1x8xf32, #tpu.memory_space<vmem>>, vector<1x8xf32>,
    } else {
    }
    return
  }
  func.func @transform_0(%arg0: i32) -> (i32, i32) {
    %c0_i32 = arith.constant 0 : i32
    %c0_i32_0 = arith.constant 0 : i32
    %c0_i32_1 = arith.constant 0 : i32
    return %c0_i32, %c0_i32_0 : i32, i32
  }
  func.func @transform_1(%arg0: i32) -> (i32, i32) {
    %c0_i32 = arith.constant 0 : i32
    %c0_i32_0 = arith.constant 0 : i32
    return %arg0, %c0_i32 : i32, i32
  }
  func.func @transform_2(%arg0: i32) -> (i32, i32) {
    %c0_i32 = arith.constant 0 : i32
    %c0_i32_0 = arith.constant 0 : i32
    %c0_i32_1 = arith.constant 0 : i32
    return %c0_i32, %c0_i32_0 : i32, i32
  }
  func.func @transform_3(%arg0: i32) -> (i32, i32) {
    %c0_i32 = arith.constant 0 : i32
    %c0_i32_0 = arith.constant 0 : i32
    %c0_i32_1 = arith.constant 0 : i32
    return %c0_i32, %c0_i32_0 : i32, i32
  }
  func.func @transform_4(%arg0: i32) -> (i32, i32) {
    %c0_i32 = arith.constant 0 : i32
    %c0_i32_0 = arith.constant 0 : i32
    %c0_i32_1 = arith.constant 0 : i32
    return %c0_i32, %c0_i32_0 : i32, i32
  }
  func.func @transform_5(%arg0: i32) -> (i32, i32) {
    %c0_i32 = arith.constant 0 : i32
    %c0_i32_0 = arith.constant 0 : i32
    %c0_i32_1 = arith.constant 0 : i32
    return %c0_i32, %c0_i32_0 : i32, i32
  }
  func.func @transform_6(%arg0: i32) -> (i32, i32) {
    %c0_i32 = arith.constant 0 : i32
    %c0_i32_0 = arith.constant 0 : i32
    %c0_i32_1 = arith.constant 0 : i32
    return %c0_i32, %c0_i32_0 : i32, i32
  }
}

</mosaic_0001>

<bundles_post_ra>
// kernel: gcn_forward.1
= control target key start
LH: loop header
LB: loop body
LE: loop exit
PB: predicated region body
PF: predicated region fallthrough
CT: control target
= control target key end

     0   :  { %11 = vsyncpa [#allocation6], 0  ;;  %s1659_s21 = smov 0   ;;  %s1890_s0 = inlined_call_operand.vmem [shape: bf16[256,128], index: 0, kind: input, shape index: {}]   ;;  %s1891_s1 = inlined_call_operand.vmem [shape: bf16[256,256], index: 1, kind: input, shape index: {}]   ;;  %s1892_s2 = inlined_call_operand.vmem [shape: bf16[128,32], index: 2, kind: input, shape index: {}]   ;;  %s1893_s3 = inlined_call_operand.vmem [shape: f32[32,8], index: 3, kind: input, shape index: {}]   ;;  %s1894_s4 = inlined_call_operand.vmem [shape: f32[8,8], index: 4, kind: input, shape index: {}]   ;;  %s1895_s5 = inlined_call_operand.vmem [shape: f32[1,8], index: 5, kind: input, shape index: {}]   ;;  %s1896_s6 = inlined_call_operand.hbm [shape: f32[1,8], index: 6, kind: output, shape index: {}]  }
   0x1 LB: > { %s1665_s22 = sadd.s32 4294967295, %s1620_s21   ;;  %p1232_p0 = scmp.ge.s32.totalorder %s1620_s21, 1  ;;  %s1620_s21 = sphi %s1659_s21, %s17_s21  }
   0x2   : > { %p210_p1 = scmp.lt.s32.totalorder %s1620_s21, 3 }
   0x4   : > { %p211_p2 = pnand %p1232_p0, %p210_p1 }
   0x5   : > { %s1233_s23 = sshll.u32 (!%p211_p2), %s1665_s22, 4  ;;  %p1236_p4 = scmp.ne.s32.totalorder (!%p211_p2), %s1665_s22, 0 }
   0x6   : > { %214 = sbr.rel (%p211_p2) target bundleno = 911 (0x38f), region = 44  ;;  %p237_p3 = scmp.lt.s32.totalorder (!%p211_p2), %s1233_s23, 31 }
   0xb   : > { %s1898_s23 = smov (!%p237_p3, %s1233_s23), 31  ;;  %246 = sbr.rel (%p1236_p4) target bundleno = 241 (0xf1), region = 48 }
   0xc   : > { %s1469_s24 = sshll.u32 %s1898_s23, 3 }
   0xd   : > { %s1673_s27 = scalar_lea.vmem %s1891_s1, %s1469_s24 }
  0x10   : > { %v1493_v0 = vld [vmem:[%s1892_s2 + $0x38] sm:$0xff]  ;;  %v1492_v1 = vld [vmem:[%s1892_s2 + $0x30] sm:$0xff]  ;;  %v1491_v2 = vld [vmem:[%s1892_s2 + $0x28] sm:$0xff]  ;;  %vm560_vm0 = vcmask 257024   ;;  %v593_v58 = vlaneseq  ;;  %v1622_v61 = vmov 0.0  }
  0x11   : > { %439 = vmatpush.bf16.msra.mxu0 %v1493_v0  ;;  %1526 = vmatpush.bf16.msra.mxu1 %v1493_v0  ;;  %v1490_v3 = vld [vmem:[%s1892_s2 + $0x20] sm:$0xff]  ;;  %v1489_v4 = vld [vmem:[%s1892_s2 + $0x18] sm:$0xff]  ;;  %v1488_v5 = vld [vmem:[%s1892_s2 + $0x10] sm:$0xff] }
  0x12   : > { %1527 = vmatpush.bf16.msra.mxu2 %v1493_v0  ;;  %1528 = vmatpush.bf16.msra.mxu3 %v1493_v0  ;;  %v1487_v6 = vld [vmem:[%s1892_s2 + $0x8] sm:$0xff]  ;;  %v1486_v7 = vld [vmem:[%s1892_s2] sm:$0xff]  ;;  %v1472_v16 = vld [vmem:[%s1890_s0 + $0x10] sm:$0xff]  ;;  %vm595_vm1 = vcmp.lt.s32.totalorder %v593_v58, 256 }
  0x13   : > { %v1470_v8 = vld [vmem:[%s1890_s0] sm:$0xff]  ;;  %v1471_v12 = vld [vmem:[%s1890_s0 + $0x8] sm:$0xff]  ;;  %v1476_v17 = vld [vmem:[%s1890_s0 + $0x30] sm:$0xff]  ;;  %597 = vst.msk [vmem:[#allocation4] sm:$0x3] %vm595_vm1, %v1622_v61 }
  0x14   : > { %v1474_v9 = vld [vmem:[%s1890_s0 + $0x20] sm:$0xff]  ;;  %v1475_v13 = vld [vmem:[%s1890_s0 + $0x28] sm:$0xff]  ;;  %v1480_v18 = vld [vmem:[%s1890_s0 + $0x50] sm:$0xff] }
  0x15   : > { %440 = vmatpush.bf16.msra.mxu0 %v1492_v1  ;;  %1529 = vmatpush.bf16.msra.mxu1 %v1492_v1  ;;  %v1478_v10 = vld [vmem:[%s1890_s0 + $0x40] sm:$0xff]  ;;  %v1479_v14 = vld [vmem:[%s1890_s0 + $0x48] sm:$0xff]  ;;  %v1484_v19 = vld [vmem:[%s1890_s0 + $0x70] sm:$0xff] }
  0x16   : > { %1530 = vmatpush.bf16.msra.mxu2 %v1492_v1  ;;  %1531 = vmatpush.bf16.msra.mxu3 %v1492_v1  ;;  %v1482_v11 = vld [vmem:[%s1890_s0 + $0x60] sm:$0xff]  ;;  %v1483_v15 = vld [vmem:[%s1890_s0 + $0x68] sm:$0xff]  ;;  %v1473_v20 = vld [vmem:[%s1890_s0 + $0x18] sm:$0xff] }
  0x17   : > { %v1477_v21 = vld [vmem:[%s1890_s0 + $0x38] sm:$0xff] }
  0x18   : > { %v1481_v22 = vld [vmem:[%s1890_s0 + $0x58] sm:$0xff] }
  0x19   : > { %441 = vmatpush.bf16.msra.mxu0 %v1491_v2  ;;  %1532 = vmatpush.bf16.msra.mxu1 %v1491_v2  ;;  %v1485_v23 = vld [vmem:[%s1890_s0 + $0x78] sm:$0xff] }
  0x1a   : > { %1533 = vmatpush.bf16.msra.mxu2 %v1491_v2  ;;  %1534 = vmatpush.bf16.msra.mxu3 %v1491_v2 }
  0x1d   : > { %442 = vmatpush.bf16.msra.mxu0 %v1490_v3  ;;  %1535 = vmatpush.bf16.msra.mxu1 %v1490_v3 }
  0x1e   : > { %1536 = vmatpush.bf16.msra.mxu2 %v1490_v3  ;;  %1537 = vmatpush.bf16.msra.mxu3 %v1490_v3 }
  0x21   : > { %443 = vmatpush.bf16.msra.mxu0 %v1489_v4  ;;  %1538 = vmatpush.bf16.msra.mxu1 %v1489_v4 }
  0x22   : > { %1539 = vmatpush.bf16.msra.mxu2 %v1489_v4  ;;  %1540 = vmatpush.bf16.msra.mxu3 %v1489_v4 }
  0x25   : > { %444 = vmatpush.bf16.msra.mxu0 %v1488_v5  ;;  %1541 = vmatpush.bf16.msra.mxu1 %v1488_v5 }
  0x26   : > { %1542 = vmatpush.bf16.msra.mxu2 %v1488_v5  ;;  %1543 = vmatpush.bf16.msra.mxu3 %v1488_v5 }
  0x29   : > { %445 = vmatpush.bf16.msra.mxu0 %v1487_v6  ;;  %1544 = vmatpush.bf16.msra.mxu1 %v1487_v6 }
  0x2a   : > { %1545 = vmatpush.bf16.msra.mxu2 %v1487_v6  ;;  %1546 = vmatpush.bf16.msra.mxu3 %v1487_v6 }
  0x2d   : > { %446 = vmatpush.bf16.msra.mxu0 %v1486_v7  ;;  %1547 = vmatpush.bf16.msra.mxu1 %v1486_v7 }
  0x2e   : > { %1548 = vmatpush.bf16.msra.mxu2 %v1486_v7  ;;  %1549 = vmatpush.bf16.msra.mxu3 %v1486_v7 }
  0x30   : > { %447 = vmatmul.bf16.vlgmr.msra.gmra.mxu0 %v1470_v8  ;;  %467 = vmatmul.bf16.vlgmr.msra.gmra.mxu1 %v1474_v9 }
  0x31   : > { %487 = vmatmul.bf16.vlgmr.msra.gmra.mxu2 %v1478_v10  ;;  %507 = vmatmul.bf16.vlgmr.msra.gmra.mxu3 %v1482_v11 }
  0x40   : > { %452 = vmatmul.bf16.gmra.mxu0 %v1471_v12  ;;  %472 = vmatmul.bf16.gmra.mxu1 %v1475_v13 }
  0x41   : > { %492 = vmatmul.bf16.gmra.mxu2 %v1479_v14  ;;  %512 = vmatmul.bf16.gmra.mxu3 %v1483_v15 }
  0x50   : > { %457 = vmatmul.bf16.gmra.mxu0 %v1472_v16  ;;  %477 = vmatmul.bf16.gmra.mxu1 %v1476_v17 }
  0x51   : > { %497 = vmatmul.bf16.gmra.mxu2 %v1480_v18  ;;  %517 = vmatmul.bf16.gmra.mxu3 %v1484_v19 }
  0x60   : > { %462 = vmatmul.bf16.gmra.mxu0 %v1473_v20  ;;  %482 = vmatmul.bf16.gmra.mxu1 %v1477_v21 }
  0x61   : > { %502 = vmatmul.bf16.gmra.mxu2 %v1481_v22  ;;  %522 = vmatmul.bf16.gmra.mxu3 %v1485_v23 }
  0xad   : > { %v448_v24 = vpop.f32.mrf.mxu0  ;;  %v468_v25 = vpop.f32.mrf.mxu1 }
  0xae   : > { %v528_v26 = vpack.c.bf16 %v448_v24, %v448_v24  ;;  %v536_v27 = vpack.c.bf16 %v468_v25, %v468_v25 }
  0xb0   : > { %561 = vst.msk [vmem:[#allocation2] sm:$0xf] %vm560_vm0, %v528_v26 }
  0xb1   : > { %569 = vst.msk [vmem:[#allocation2 + $0x20] sm:$0xf] %vm560_vm0, %v536_v27 }
  0xb4   : > { %v488_v28 = vpop.f32.mrf.mxu2  ;;  %v508_v29 = vpop.f32.mrf.mxu3 }
  0xb5   : > { %v544_v30 = vpack.c.bf16 %v488_v28, %v488_v28  ;;  %v552_v31 = vpack.c.bf16 %v508_v29, %v508_v29  ;;  %v450_v32 = vpop.f32.mrf.mxu0  ;;  %v470_v33 = vpop.f32.mrf.mxu1 }
  0xb6   : > { %v529_v34 = vpack.c.bf16 %v450_v32, %v450_v32  ;;  %v537_v35 = vpack.c.bf16 %v470_v33, %v470_v33 }
  0xb7   : > { %577 = vst.msk [vmem:[#allocation2 + $0x40] sm:$0xf] %vm560_vm0, %v544_v30 }
  0xb8   : > { %585 = vst.msk [vmem:[#allocation2 + $0x60] sm:$0xf] %vm560_vm0, %v552_v31 }
  0xb9   : > { %562 = vst.msk [vmem:[#allocation2 + $0x4] sm:$0xf] %vm560_vm0, %v529_v34 }
  0xba   : > { %570 = vst.msk [vmem:[#allocation2 + $0x24] sm:$0xf] %vm560_vm0, %v537_v35 }
  0xbc   : > { %v490_v36 = vpop.f32.mrf.mxu2  ;;  %v510_v37 = vpop.f32.mrf.mxu3 }
  0xbd   : > { %v545_v38 = vpack.c.bf16 %v490_v36, %v490_v36  ;;  %v553_v39 = vpack.c.bf16 %v510_v37, %v510_v37  ;;  %v453_v40 = vpop.f32.mrf.mxu0  ;;  %v473_v41 = vpop.f32.mrf.mxu1 }
  0xbe   : > { %v530_v42 = vpack.c.bf16 %v453_v40, %v453_v40  ;;  %v538_v43 = vpack.c.bf16 %v473_v41, %v473_v41 }
  0xbf   : > { %578 = vst.msk [vmem:[#allocation2 + $0x44] sm:$0xf] %vm560_vm0, %v545_v38 }
  0xc0   : > { %586 = vst.msk [vmem:[#allocation2 + $0x64] sm:$0xf] %vm560_vm0, %v553_v39 }
  0xc1   : > { %563 = vst.msk [vmem:[#allocation2 + $0x8] sm:$0xf] %vm560_vm0, %v530_v42 }
  0xc2   : > { %571 = vst.msk [vmem:[#allocation2 + $0x28] sm:$0xf] %vm560_vm0, %v538_v43 }
  0xc4   : > { %v493_v44 = vpop.f32.mrf.mxu2  ;;  %v513_v45 = vpop.f32.mrf.mxu3 }
  0xc5   : > { %v546_v46 = vpack.c.bf16 %v493_v44, %v493_v44  ;;  %v554_v47 = vpack.c.bf16 %v513_v45, %v513_v45  ;;  %v455_v48 = vpop.f32.mrf.mxu0  ;;  %v475_v49 = vpop.f32.mrf.mxu1 }
  0xc6   : > { %v531_v50 = vpack.c.bf16 %v455_v48, %v455_v48  ;;  %v539_v51 = vpack.c.bf16 %v475_v49, %v475_v49 }
  0xc7   : > { %579 = vst.msk [vmem:[#allocation2 + $0x48] sm:$0xf] %vm560_vm0, %v546_v46 }
  0xc8   : > { %587 = vst.msk [vmem:[#allocation2 + $0x68] sm:$0xf] %vm560_vm0, %v554_v47 }
  0xc9   : > { %564 = vst.msk [vmem:[#allocation2 + $0xc] sm:$0xf] %vm560_vm0, %v531_v50 }
  0xca   : > { %572 = vst.msk [vmem:[#allocation2 + $0x2c] sm:$0xf] %vm560_vm0, %v539_v51 }
  0xcc   : > { %v495_v52 = vpop.f32.mrf.mxu2  ;;  %v515_v53 = vpop.f32.mrf.mxu3 }
  0xcd   : > { %v547_v54 = vpack.c.bf16 %v495_v52, %v495_v52  ;;  %v555_v55 = vpack.c.bf16 %v515_v53, %v515_v53  ;;  %v458_v56 = vpop.f32.mrf.mxu0  ;;  %v478_v57 = vpop.f32.mrf.mxu1 }
  0xce   : > { %v532_v59 = vpack.c.bf16 %v458_v56, %v458_v56  ;;  %v540_v60 = vpack.c.bf16 %v478_v57, %v478_v57 }
  0xcf   : > { %580 = vst.msk [vmem:[#allocation2 + $0x4c] sm:$0xf] %vm560_vm0, %v547_v54 }
  0xd0   : > { %588 = vst.msk [vmem:[#allocation2 + $0x6c] sm:$0xf] %vm560_vm0, %v555_v55 }
  0xd1   : > { %565 = vst.msk [vmem:[#allocation2 + $0x10] sm:$0xf] %vm560_vm0, %v532_v59 }
  0xd2   : > { %573 = vst.msk [vmem:[#allocation2 + $0x30] sm:$0xf] %vm560_vm0, %v540_v60 }
  0xd4   : > { %v498_v62 = vpop.f32.mrf.mxu2  ;;  %v518_v63 = vpop.f32.mrf.mxu3 }
  0xd5   : > { %v548_v0 = vpack.c.bf16 %v498_v62, %v498_v62  ;;  %v556_v1 = vpack.c.bf16 %v518_v63, %v518_v63  ;;  %v460_v2 = vpop.f32.mrf.mxu0  ;;  %v480_v3 = vpop.f32.mrf.mxu1 }
  0xd6   : > { %v533_v4 = vpack.c.bf16 %v460_v2, %v460_v2  ;;  %v541_v5 = vpack.c.bf16 %v480_v3, %v480_v3 }
  0xd7   : > { %581 = vst.msk [vmem:[#allocation2 + $0x50] sm:$0xf] %vm560_vm0, %v548_v0 }
  0xd8   : > { %589 = vst.msk [vmem:[#allocation2 + $0x70] sm:$0xf] %vm560_vm0, %v556_v1 }
  0xd9   : > { %566 = vst.msk [vmem:[#allocation2 + $0x14] sm:$0xf] %vm560_vm0, %v533_v4 }
  0xda   : > { %574 = vst.msk [vmem:[#allocation2 + $0x34] sm:$0xf] %vm560_vm0, %v541_v5 }
  0xdc   : > { %v500_v6 = vpop.f32.mrf.mxu2  ;;  %v520_v7 = vpop.f32.mrf.mxu3 }
  0xdd   : > { %v549_v8 = vpack.c.bf16 %v500_v6, %v500_v6  ;;  %v557_v9 = vpack.c.bf16 %v520_v7, %v520_v7  ;;  %v463_v10 = vpop.f32.mrf.mxu0  ;;  %v483_v11 = vpop.f32.mrf.mxu1 }
  0xde   : > { %v534_v12 = vpack.c.bf16 %v463_v10, %v463_v10  ;;  %v542_v13 = vpack.c.bf16 %v483_v11, %v483_v11 }
  0xdf   : > { %582 = vst.msk [vmem:[#allocation2 + $0x54] sm:$0xf] %vm560_vm0, %v549_v8 }
  0xe0   : > { %590 = vst.msk [vmem:[#allocation2 + $0x74] sm:$0xf] %vm560_vm0, %v557_v9 }
  0xe1   : > { %567 = vst.msk [vmem:[#allocation2 + $0x18] sm:$0xf] %vm560_vm0, %v534_v12 }
  0xe2   : > { %575 = vst.msk [vmem:[#allocation2 + $0x38] sm:$0xf] %vm560_vm0, %v542_v13 }
  0xe4   : > { %v503_v14 = vpop.f32.mrf.mxu2  ;;  %v523_v15 = vpop.f32.mrf.mxu3 }
  0xe5   : > { %v550_v16 = vpack.c.bf16 %v503_v14, %v503_v14  ;;  %v558_v17 = vpack.c.bf16 %v523_v15, %v523_v15  ;;  %v465_v18 = vpop.f32.mrf.mxu0  ;;  %v485_v19 = vpop.f32.mrf.mxu1 }
  0xe6   : > { %v535_v20 = vpack.c.bf16 %v465_v18, %v465_v18  ;;  %v543_v21 = vpack.c.bf16 %v485_v19, %v485_v19 }
  0xe7   : > { %583 = vst.msk [vmem:[#allocation2 + $0x58] sm:$0xf] %vm560_vm0, %v550_v16 }
  0xe8   : > { %591 = vst.msk [vmem:[#allocation2 + $0x78] sm:$0xf] %vm560_vm0, %v558_v17 }
  0xe9   : > { %568 = vst.msk [vmem:[#allocation2 + $0x1c] sm:$0xf] %vm560_vm0, %v535_v20 }
  0xea   : > { %576 = vst.msk [vmem:[#allocation2 + $0x3c] sm:$0xf] %vm560_vm0, %v543_v21 }
  0xec   : > { %v505_v22 = vpop.f32.mrf.mxu2  ;;  %v525_v23 = vpop.f32.mrf.mxu3 }
  0xed   : > { %v551_v24 = vpack.c.bf16 %v505_v22, %v505_v22  ;;  %v559_v25 = vpack.c.bf16 %v525_v23, %v525_v23 }
  0xef   : > { %584 = vst.msk [vmem:[#allocation2 + $0x5c] sm:$0xf] %vm560_vm0, %v551_v24 }
  0xf0   : > { %592 = vst.msk [vmem:[#allocation2 + $0x7c] sm:$0xf] %vm560_vm0, %v559_v25 }
  0xf1 PF: > { %v1517_v26 = vld [vmem:[#allocation2 + $0x38] sm:$0xff]  ;;  %v1516_v28 = vld [vmem:[#allocation2 + $0x30] sm:$0xff]  ;;  %v1515_v30 = vld [vmem:[#allocation2 + $0x28] sm:$0xff]  ;;  %s1461_s10 = sshll.u32 %s1665_s22, 7  ;;  %vm938_vm2 = vcmask 261120   ;;  %vm1033_vm3 = vcmask 1040384  }
  0xf2   : > { %822 = vmatpush.bf16.msra.mxu0 %v1517_v26  ;;  %1550 = vmatpush.bf16.msra.mxu2 %v1517_v26  ;;  %v1524_v29 = vld [vmem:[#allocation2 + $0x70] sm:$0xff]  ;;  %v1523_v31 = vld [vmem:[#allocation2 + $0x68] sm:$0xff]  ;;  %v1514_v32 = vld [vmem:[#allocation2 + $0x20] sm:$0xff]  ;;  %s1826_s11 = scalar_lea.vmem [#allocation3], %s1461_s10  ;;  %p1462_p5 = scmp.ne.s32.totalorder %s1665_s22, 1 }
  0xf3   : > { %v1522_v33 = vld [vmem:[#allocation2 + $0x60] sm:$0xff]  ;;  %v1513_v34 = vld [vmem:[#allocation2 + $0x18] sm:$0xff]  ;;  %v1512_v36 = vld [vmem:[#allocation2 + $0x10] sm:$0xff] }
  0xf4   : > { %v1520_v37 = vld [vmem:[#allocation2 + $0x50] sm:$0xff]  ;;  %v1511_v38 = vld [vmem:[#allocation2 + $0x8] sm:$0xff]  ;;  %v1510_v40 = vld [vmem:[#allocation2] sm:$0xff] }
  0xf5   : > { %v1519_v39 = vld [vmem:[#allocation2 + $0x48] sm:$0xff]  ;;  %v1518_v41 = vld [vmem:[#allocation2 + $0x40] sm:$0xff]  ;;  %v1343_v54 = vld [vmem:[%s1673_s27 + $0x10] sm:$0xf] }
  0xf6   : > { %823 = vmatpush.bf16.msra.mxu0 %v1516_v28  ;;  %1551 = vmatpush.bf16.msra.mxu2 %v1516_v28  ;;  %v1521_v35 = vld [vmem:[#allocation2 + $0x58] sm:$0xff]  ;;  %v1335_v42 = vld [vmem:[%s1673_s27] sm:$0xf]  ;;  %v1495_v43 = vld [vmem:[%s1673_s27 + $0x4] sm:$0xf0] }
  0xf7   : > { %v1525_v27 = vld [vmem:[#allocation2 + $0x78] sm:$0xff]  ;;  %v1367_v44 = vld [vmem:[%s1673_s27 + $0x40] sm:$0xf]  ;;  %v1503_v45 = vld [vmem:[%s1673_s27 + $0x44] sm:$0xf0]  ;;  %v1336_v50 = vor.u32 %v1495_v43, %v1335_v42 }
  0xf8   : > { %871 = vmatpush.bf16.msra.mxu1 %v1525_v27  ;;  %1558 = vmatpush.bf16.msra.mxu3 %v1525_v27  ;;  %v1494_v46 = vld [vmem:[%s1673_s27 + $0x4] sm:$0xf]  ;;  %v1337_v47 = vld [vmem:[%s1673_s27 + $0x8] sm:$0xf0]  ;;  %v1368_v51 = vor.u32 %v1503_v45, %v1367_v44  ;;  %v1497_v55 = vld [vmem:[%s1673_s27 + $0x14] sm:$0xf0] }
  0xf9   : > { %v1502_v48 = vld [vmem:[%s1673_s27 + $0x44] sm:$0xf]  ;;  %v1369_v49 = vld [vmem:[%s1673_s27 + $0x48] sm:$0xf0]  ;;  %v1340_v52 = vor.u32 %v1494_v46, %v1337_v47  ;;  %v1375_v56 = vld [vmem:[%s1673_s27 + $0x50] sm:$0xf]  ;;  %v1344_v62 = vor.u32 %v1497_v55, %v1343_v54 }
  0xfa   : > { %824 = vmatpush.bf16.msra.mxu0 %v1515_v30  ;;  %1552 = vmatpush.bf16.msra.mxu2 %v1515_v30  ;;  %v1372_v53 = vor.u32 %v1502_v48, %v1369_v49  ;;  %v1505_v57 = vld [vmem:[%s1673_s27 + $0x54] sm:$0xf0]  ;;  %v1496_v58 = vld [vmem:[%s1673_s27 + $0x14] sm:$0xf]  ;;  %v1345_v59 = vld [vmem:[%s1673_s27 + $0x18] sm:$0xf0] }
  0xfb   : > { %v1504_v60 = vld [vmem:[%s1673_s27 + $0x54] sm:$0xf]  ;;  %v1377_v61 = vld [vmem:[%s1673_s27 + $0x58] sm:$0xf0]  ;;  %v1376_v63 = vor.u32 %v1505_v57, %v1375_v56  ;;  %v1348_v0 = vor.u32 %v1496_v58, %v1345_v59  ;;  %v1351_v2 = vld [vmem:[%s1673_s27 + $0x20] sm:$0xf] }
  0xfc   : > { %872 = vmatpush.bf16.msra.mxu1 %v1524_v29  ;;  %1559 = vmatpush.bf16.msra.mxu3 %v1524_v29  ;;  %v1380_v1 = vor.u32 %v1504_v60, %v1377_v61  ;;  %v1499_v3 = vld [vmem:[%s1673_s27 + $0x24] sm:$0xf0]  ;;  %v1383_v4 = vld [vmem:[%s1673_s27 + $0x60] sm:$0xf]  ;;  %v1498_v6 = vld [vmem:[%s1673_s27 + $0x24] sm:$0xf] }
  0xfd   : > { %v1507_v5 = vld [vmem:[%s1673_s27 + $0x64] sm:$0xf0]  ;;  %v1353_v7 = vld [vmem:[%s1673_s27 + $0x28] sm:$0xf0]  ;;  %v1506_v8 = vld [vmem:[%s1673_s27 + $0x64] sm:$0xf]  ;;  %v1352_v10 = vor.u32 %v1499_v3, %v1351_v2 }
  0xfe   : > { %825 = vmatpush.bf16.msra.mxu0 %v1514_v32  ;;  %1553 = vmatpush.bf16.msra.mxu2 %v1514_v32  ;;  %v1385_v9 = vld [vmem:[%s1673_s27 + $0x68] sm:$0xf0]  ;;  %v1384_v11 = vor.u32 %v1507_v5, %v1383_v4  ;;  %v1356_v12 = vor.u32 %v1498_v6, %v1353_v7  ;;  %v1359_v14 = vld [vmem:[%s1673_s27 + $0x30] sm:$0xf]  ;;  %v1501_v15 = vld [vmem:[%s1673_s27 + $0x34] sm:$0xf0] }
  0xff   : > { %v1388_v13 = vor.u32 %v1506_v8, %v1385_v9  ;;  %v1391_v16 = vld [vmem:[%s1673_s27 + $0x70] sm:$0xf]  ;;  %v1509_v17 = vld [vmem:[%s1673_s27 + $0x74] sm:$0xf0]  ;;  %v1500_v18 = vld [vmem:[%s1673_s27 + $0x34] sm:$0xf]  ;;  %v1360_v22 = vor.u32 %v1501_v15, %v1359_v14 }
 0x100   : > { %873 = vmatpush.bf16.msra.mxu1 %v1523_v31  ;;  %1560 = vmatpush.bf16.msra.mxu3 %v1523_v31  ;;  %v1361_v19 = vld [vmem:[%s1673_s27 + $0x38] sm:$0xf0]  ;;  %v1508_v20 = vld [vmem:[%s1673_s27 + $0x74] sm:$0xf]  ;;  %v1392_v23 = vor.u32 %v1509_v17, %v1391_v16  ;;  %v598_v26 = vld [vmem:[%s1673_s27] sm:$0xff] }
 0x101   : > { %v1393_v21 = vld [vmem:[%s1673_s27 + $0x78] sm:$0xf0]  ;;  %v1364_v24 = vor.u32 %v1500_v18, %v1361_v19  ;;  %v599_v27 = vld [vmem:[%s1673_s27 + $0x8] sm:$0xff]  ;;  %v600_v28 = vld [vmem:[%s1673_s27 + $0x10] sm:$0xff]  ;;  %v957_v29 = vunpack.c.h.bf16 %v598_v26  ;;  %v956_v32 = vunpack.c.l.bf16 %v598_v26 }
 0x102   : > { %826 = vmatpush.bf16.msra.mxu0 %v1513_v34  ;;  %1554 = vmatpush.bf16.msra.mxu2 %v1513_v34  ;;  %v1396_v25 = vor.u32 %v1508_v20, %v1393_v21  ;;  %v959_v30 = vunpack.c.h.bf16 %v599_v27  ;;  %v601_v31 = vld [vmem:[%s1673_s27 + $0x18] sm:$0xff]  ;;  %v961_v34 = vunpack.c.h.bf16 %v600_v28  ;;  %v604_v46 = vld [vmem:[%s1673_s27 + $0x30] sm:$0xff]  ;;  %v606_v56 = vld [vmem:[%s1673_s27 + $0x40] sm:$0xff] }
 0x103   : > { %v962_v42 = vunpack.c.l.bf16 %v601_v31  ;;  %v968_v57 = vunpack.c.l.bf16 %v604_v46  ;;  %v607_v61 = vld [vmem:[%s1673_s27 + $0x48] sm:$0xff]  ;;  %v608_v4 = vld [vmem:[%s1673_s27 + $0x50] sm:$0xff]  ;;  %v972_v6 = vunpack.c.l.bf16 %v606_v56  ;;  %v610_v16 = vld [vmem:[%s1673_s27 + $0x60] sm:$0xff] }
 0x104   : > { %874 = vmatpush.bf16.msra.mxu1 %v1522_v33  ;;  %1561 = vmatpush.bf16.msra.mxu3 %v1522_v33  ;;  %v958_v33 = vunpack.c.l.bf16 %v599_v27  ;;  %v975_v7 = vunpack.c.h.bf16 %v607_v61  ;;  %v976_v19 = vunpack.c.l.bf16 %v608_v4 }
 0x106   : > { %827 = vmatpush.bf16.msra.mxu0 %v1512_v36  ;;  %1555 = vmatpush.bf16.msra.mxu2 %v1512_v36  ;;  %v602_v36 = vld [vmem:[%s1673_s27 + $0x20] sm:$0xff] }
 0x107   : > { %v965_v43 = vunpack.c.h.bf16 %v602_v36  ;;  %v964_v47 = vunpack.c.l.bf16 %v602_v36 }
 0x108   : > { %875 = vmatpush.bf16.msra.mxu1 %v1521_v35  ;;  %1562 = vmatpush.bf16.msra.mxu3 %v1521_v35  ;;  %v1009_v35 = vadd.f32 %v959_v30, %v957_v29 }
 0x10a   : > { %828 = vmatpush.bf16.msra.mxu0 %v1511_v38  ;;  %1556 = vmatpush.bf16.msra.mxu2 %v1511_v38  ;;  %v963_v38 = vunpack.c.h.bf16 %v601_v31  ;;  %v612_v31 = vld [vmem:[%s1673_s27 + $0x70] sm:$0xff] }
 0x10c   : > { %876 = vmatpush.bf16.msra.mxu1 %v1520_v37  ;;  %1563 = vmatpush.bf16.msra.mxu3 %v1520_v37  ;;  %v960_v37 = vunpack.c.l.bf16 %v600_v28  ;;  %v981_v28 = vunpack.c.h.bf16 %v610_v16 }
 0x10e   : > { %829 = vmatpush.bf16.msra.mxu0 %v1510_v40  ;;  %1557 = vmatpush.bf16.msra.mxu2 %v1510_v40  ;;  %v1010_v40 = vadd.f32 %v1009_v35, %v961_v34  ;;  %v980_v34 = vunpack.c.l.bf16 %v610_v16 }
 0x110   : > { %877 = vmatpush.bf16.msra.mxu1 %v1519_v39  ;;  %1564 = vmatpush.bf16.msra.mxu3 %v1519_v39  ;;  %v988_v39 = vadd.f32 %v958_v33, %v956_v32  ;;  %v1011_v45 = vadd.f32 %v1010_v40, %v963_v38  ;;  %v613_v38 = vld [vmem:[%s1673_s27 + $0x78] sm:$0xff] }
 0x111   : > { %830 = vmatmul.bf16.vlgmr.msra.gmra.mxu0 %v1336_v50  ;;  %850 = vmatmul.bf16.vlgmr.msra.gmra.mxu2 %v1368_v51  ;;  %v605_v51 = vld [vmem:[%s1673_s27 + $0x38] sm:$0xff] }
 0x112   : > { %v989_v44 = vadd.f32 %v988_v39, %v960_v37  ;;  %v1012_v50 = vadd.f32 %v1011_v45, %v965_v43  ;;  %v971_v58 = vunpack.c.h.bf16 %v605_v51 }
 0x114   : > { %878 = vmatpush.bf16.msra.mxu1 %v1518_v41  ;;  %1565 = vmatpush.bf16.msra.mxu3 %v1518_v41  ;;  %v603_v41 = vld [vmem:[%s1673_s27 + $0x28] sm:$0xff]  ;;  %v990_v49 = vadd.f32 %v989_v44, %v962_v42 }
 0x115   : > { %v967_v48 = vunpack.c.h.bf16 %v603_v41 }
 0x116   : > { %v991_v54 = vadd.f32 %v990_v49, %v964_v47  ;;  %v987_v47 = vunpack.c.h.bf16 %v613_v38 }
 0x117   : > { %879 = vmatmul.bf16.vlgmr.msra.gmra.mxu1 %v1340_v52  ;;  %899 = vmatmul.bf16.vlgmr.msra.gmra.mxu3 %v1372_v53  ;;  %v966_v52 = vunpack.c.l.bf16 %v603_v41  ;;  %v969_v53 = vunpack.c.h.bf16 %v604_v46  ;;  %v1013_v55 = vadd.f32 %v1012_v50, %v967_v48  ;;  %v985_v41 = vunpack.c.h.bf16 %v612_v31 }
 0x118   : > { %v984_v46 = vunpack.c.l.bf16 %v612_v31 }
 0x119   : > { %v992_v59 = vadd.f32 %v991_v54, %v966_v52  ;;  %v1014_v60 = vadd.f32 %v1013_v55, %v969_v53  ;;  %v986_v53 = vunpack.c.l.bf16 %v613_v38 }
 0x11b   : > { %v993_v2 = vadd.f32 %v992_v59, %v968_v57  ;;  %v1015_v3 = vadd.f32 %v1014_v60, %v971_v58 }
 0x121   : > { %835 = vmatmul.bf16.gmra.mxu0 %v1344_v62  ;;  %855 = vmatmul.bf16.gmra.mxu2 %v1376_v63 }
 0x127   : > { %884 = vmatmul.bf16.gmra.mxu1 %v1348_v0  ;;  %904 = vmatmul.bf16.gmra.mxu3 %v1380_v1  ;;  %v970_v0 = vunpack.c.l.bf16 %v605_v51  ;;  %v973_v1 = vunpack.c.h.bf16 %v606_v56 }
 0x129   : > { %v994_v8 = vadd.f32 %v993_v2, %v970_v0  ;;  %v1016_v9 = vadd.f32 %v1015_v3, %v973_v1 }
 0x12b   : > { %v995_v14 = vadd.f32 %v994_v8, %v972_v6  ;;  %v1017_v15 = vadd.f32 %v1016_v9, %v975_v7 }
 0x131   : > { %840 = vmatmul.bf16.gmra.mxu0 %v1352_v10  ;;  %860 = vmatmul.bf16.gmra.mxu2 %v1384_v11  ;;  %v609_v10 = vld [vmem:[%s1673_s27 + $0x58] sm:$0xff] }
 0x132   : > { %v979_v20 = vunpack.c.h.bf16 %v609_v10  ;;  %v978_v27 = vunpack.c.l.bf16 %v609_v10 }
 0x137   : > { %889 = vmatmul.bf16.gmra.mxu1 %v1356_v12  ;;  %909 = vmatmul.bf16.gmra.mxu3 %v1388_v13  ;;  %v974_v12 = vunpack.c.l.bf16 %v607_v61  ;;  %v977_v13 = vunpack.c.h.bf16 %v608_v4 }
 0x139   : > { %v996_v21 = vadd.f32 %v995_v14, %v974_v12 }
 0x13b   : > { %v997_v29 = vadd.f32 %v996_v21, %v976_v19 }
 0x13d   : > { %v998_v36 = vadd.f32 %v997_v29, %v978_v27 }
 0x13f   : > { %v999_v42 = vadd.f32 %v998_v36, %v980_v34 }
 0x141   : > { %845 = vmatmul.bf16.gmra.mxu0 %v1360_v22  ;;  %865 = vmatmul.bf16.gmra.mxu2 %v1392_v23  ;;  %v1018_v22 = vadd.f32 %v1017_v15, %v977_v13  ;;  %v611_v23 = vld [vmem:[%s1673_s27 + $0x68] sm:$0xff] }
 0x142   : > { %v983_v35 = vunpack.c.h.bf16 %v611_v23  ;;  %v982_v40 = vunpack.c.l.bf16 %v611_v23 }
 0x143   : > { %v1019_v30 = vadd.f32 %v1018_v22, %v979_v20  ;;  %v955_v22 = vld [vmem:[#allocation4] sm:$0x3] }
 0x144   : > { %v1000_v48 = vadd.f32 %v999_v42, %v982_v40 }
 0x145   : > { %v1020_v37 = vadd.f32 %v1019_v30, %v981_v28 }
 0x146   : > { %v1001_v54 = vadd.f32 %v1000_v48, %v984_v46 }
 0x147   : > { %894 = vmatmul.bf16.gmra.mxu1 %v1364_v24  ;;  %914 = vmatmul.bf16.gmra.mxu3 %v1396_v25  ;;  %v1021_v43 = vadd.f32 %v1020_v37, %v983_v35 }
 0x148   : > { %v1002_v58 = vadd.f32 %v1001_v54, %v986_v53 }
 0x149   : > { %v1022_v49 = vadd.f32 %v1021_v43, %v985_v41 }
 0x14a   : > { %v1003_v61 = vrot.slane %v1002_v58, 4 }
 0x14b   : > { %v1023_v55 = vadd.f32 %v1022_v49, %v987_v47 }
 0x14c   : > { %v1004_v1 = vadd.f32 %v1003_v61, %v1002_v58 }
 0x14d   : > { %v1024_v59 = vrot.slane %v1023_v55, 4 }
 0x14e   : > { %v1005_v6 = vrot.slane %v1004_v1, 2 }
 0x150   : > { %v1006_v10 = vadd.f32 %v1005_v6, %v1004_v1 }
 0x152   : > { %v1007_v13 = vrot.slane %v1006_v10, 1 }
 0x18e   : > { %v831_v62 = vpop.f32.mrf.mxu0 }
 0x194   : > { %v880_v63 = vpop.f32.mrf.mxu1  ;;  %v851_v17 = vpop.f32.mrf.mxu2 }
 0x195   : > { %v881_v5 = vadd.f32 %v880_v63, %v831_v62  ;;  %v1025_v62 = vadd.f32 %v1024_v59, %v1023_v55 }
 0x196   : > { %v833_v25 = vpop.f32.mrf.mxu0 }
 0x197   : > { %v920_v11 = vmax.f32 %v881_v5, 0.0  ;;  %v1026_v2 = vrot.slane %v1025_v62, 2 }
 0x199   : > { %939 = vst.msk [vmem:[%s1826_s11] sm:$0xff] %vm938_vm2, %v920_v11  ;;  %v1027_v7 = vadd.f32 %v1026_v2, %v1025_v62 }
 0x19a   : > { %v900_v18 = vpop.f32.mrf.mxu3 }
 0x19b   : > { %v901_v24 = vadd.f32 %v900_v18, %v851_v17  ;;  %v1028_v11 = vrot.slane %v1027_v7, 1  ;;  %v1008_v17 = vadd.f32 %v1007_v13, %v1006_v10 }
 0x19c   : > { %v882_v26 = vpop.f32.mrf.mxu1  ;;  %v853_v44 = vpop.f32.mrf.mxu2 }
 0x19d   : > { %v928_v32 = vmax.f32 %v901_v24, 0.0  ;;  %v883_v33 = vadd.f32 %v882_v26, %v833_v25  ;;  %v1029_v14 = vadd.f32 %v1028_v11, %v1027_v7  ;;  %v1037_v24 = vlaneseq }
 0x19e   : > { %v836_v51 = vpop.f32.mrf.mxu0 }
 0x19f   : > { %947 = vst.msk [vmem:[%s1826_s11 + $0x40] sm:$0xff] %vm938_vm2, %v928_v32  ;;  %v921_v39 = vmax.f32 %v883_v33, 0.0  ;;  %v1032_v18 = vrot.slane %v1029_v14, 7  ;;  %vm1039_vm4 = vcmp.lt.s32.totalorder %v1037_v24, 256 }
 0x1a1   : > { %940 = vst.msk [vmem:[%s1826_s11 + $0x8] sm:$0xff] %vm938_vm2, %v921_v39  ;;  %v1034_v23 = vsel %vm1033_vm3, %v1008_v17, %v1032_v18 }
 0x1a2   : > { %v902_v45 = vpop.f32.mrf.mxu3  ;;  %v1036_v27 = vadd.f32 %v1034_v23, %v955_v22 }
 0x1a3   : > { %v903_v50 = vadd.f32 %v902_v45, %v853_v44 }
 0x1a4   : > { %v885_v52 = vpop.f32.mrf.mxu1  ;;  %v856_v63 = vpop.f32.mrf.mxu2  ;;  %1041 = vst.msk [vmem:[#allocation4] sm:$0x3] %vm1039_vm4, %v1036_v27 }
 0x1a5   : > { %v929_v56 = vmax.f32 %v903_v50, 0.0  ;;  %v886_v57 = vadd.f32 %v885_v52, %v836_v51 }
 0x1a6   : > { %v838_v4 = vpop.f32.mrf.mxu0 }
 0x1a7   : > { %948 = vst.msk [vmem:[%s1826_s11 + $0x48] sm:$0xff] %vm938_vm2, %v929_v56  ;;  %v922_v60 = vmax.f32 %v886_v57, 0.0 }
 0x1a9   : > { %941 = vst.msk [vmem:[%s1826_s11 + $0x10] sm:$0xff] %vm938_vm2, %v922_v60 }
 0x1aa   : > { %v905_v0 = vpop.f32.mrf.mxu3 }
 0x1ab   : > { %v906_v3 = vadd.f32 %v905_v0, %v856_v63 }
 0x1ac   : > { %v887_v5 = vpop.f32.mrf.mxu1  ;;  %v858_v15 = vpop.f32.mrf.mxu2 }
 0x1ad   : > { %v930_v8 = vmax.f32 %v906_v3, 0.0  ;;  %v888_v9 = vadd.f32 %v887_v5, %v838_v4 }
 0x1ae   : > { %v841_v20 = vpop.f32.mrf.mxu0 }
 0x1af   : > { %949 = vst.msk [vmem:[%s1826_s11 + $0x50] sm:$0xff] %vm938_vm2, %v930_v8  ;;  %v923_v12 = vmax.f32 %v888_v9, 0.0 }
 0x1b1   : > { %942 = vst.msk [vmem:[%s1826_s11 + $0x18] sm:$0xff] %vm938_vm2, %v923_v12 }
 0x1b2   : > { %v907_v16 = vpop.f32.mrf.mxu3 }
 0x1b3   : > { %v908_v19 = vadd.f32 %v907_v16, %v858_v15 }
 0x1b4   : > { %v890_v21 = vpop.f32.mrf.mxu1  ;;  %v861_v29 = vpop.f32.mrf.mxu2 }
 0x1b5   : > { %v931_v25 = vmax.f32 %v908_v19, 0.0  ;;  %v891_v26 = vadd.f32 %v890_v21, %v841_v20 }
 0x1b6   : > { %v843_v32 = vpop.f32.mrf.mxu0 }
 0x1b7   : > { %950 = vst.msk [vmem:[%s1826_s11 + $0x58] sm:$0xff] %vm938_vm2, %v931_v25  ;;  %v924_v28 = vmax.f32 %v891_v26, 0.0 }
 0x1b9   : > { %943 = vst.msk [vmem:[%s1826_s11 + $0x20] sm:$0xff] %vm938_vm2, %v924_v28 }
 0x1ba   : > { %v910_v30 = vpop.f32.mrf.mxu3 }
 0x1bb   : > { %v911_v31 = vadd.f32 %v910_v30, %v861_v29 }
 0x1bc   : > { %v892_v33 = vpop.f32.mrf.mxu1  ;;  %v863_v37 = vpop.f32.mrf.mxu2 }
 0x1bd   : > { %v932_v34 = vmax.f32 %v911_v31, 0.0  ;;  %v893_v35 = vadd.f32 %v892_v33, %v843_v32 }
 0x1be   : > { %v846_v40 = vpop.f32.mrf.mxu0 }
 0x1bf   : > { %951 = vst.msk [vmem:[%s1826_s11 + $0x60] sm:$0xff] %vm938_vm2, %v932_v34  ;;  %v925_v36 = vmax.f32 %v893_v35, 0.0 }
 0x1c1   : > { %944 = vst.msk [vmem:[%s1826_s11 + $0x28] sm:$0xff] %vm938_vm2, %v925_v36 }
 0x1c2   : > { %v912_v38 = vpop.f32.mrf.mxu3 }
 0x1c3   : > { %v913_v39 = vadd.f32 %v912_v38, %v863_v37 }
 0x1c4   : > { %v895_v41 = vpop.f32.mrf.mxu1  ;;  %v866_v45 = vpop.f32.mrf.mxu2 }
 0x1c5   : > { %v933_v42 = vmax.f32 %v913_v39, 0.0  ;;  %v896_v43 = vadd.f32 %v895_v41, %v846_v40 }
 0x1c6   : > { %v848_v48 = vpop.f32.mrf.mxu0 }
 0x1c7   : > { %952 = vst.msk [vmem:[%s1826_s11 + $0x68] sm:$0xff] %vm938_vm2, %v933_v42  ;;  %v926_v44 = vmax.f32 %v896_v43, 0.0 }
 0x1c9   : > { %945 = vst.msk [vmem:[%s1826_s11 + $0x30] sm:$0xff] %vm938_vm2, %v926_v44 }
 0x1ca   : > { %v915_v46 = vpop.f32.mrf.mxu3 }
 0x1cb   : > { %v916_v47 = vadd.f32 %v915_v46, %v866_v45 }
 0x1cc   : > { %v897_v49 = vpop.f32.mrf.mxu1  ;;  %v868_v53 = vpop.f32.mrf.mxu2 }
 0x1cd   : > { %v934_v50 = vmax.f32 %v916_v47, 0.0  ;;  %v898_v51 = vadd.f32 %v897_v49, %v848_v48 }
 0x1cf   : > { %953 = vst.msk [vmem:[%s1826_s11 + $0x70] sm:$0xff] %vm938_vm2, %v934_v50  ;;  %v927_v52 = vmax.f32 %v898_v51, 0.0 }
 0x1d1   : > { %946 = vst.msk [vmem:[%s1826_s11 + $0x38] sm:$0xff] %vm938_vm2, %v927_v52 }
 0x1d2   : > { %v917_v54 = vpop.f32.mrf.mxu3 }
 0x1d3   : > { %v918_v55 = vadd.f32 %v917_v54, %v868_v53  ;;  %1045 = sbr.rel (%p1462_p5) target bundleno = 906 (0x38a), region = 52 }
 0x1d5   : > { %v935_v56 = vmax.f32 %v918_v55, 0.0 }
 0x1d7   : > { %954 = vst.msk [vmem:[%s1826_s11 + $0x78] sm:$0xff] %vm938_vm2, %v935_v56 }
 0x1d8   : > { %v1127_v7 = vld [vmem:[%s1893_s3 + $0x18] sm:$0xff]  ;;  %v1126_v8 = vld [vmem:[%s1893_s3 + $0x10] sm:$0xff]  ;;  %v1046_v23 = vld [vmem:[#allocation4] sm:$0x3]  ;;  %vm1153_vm5 = vcmask 64512   ;;  %vm1177_vm6 = vcmask 57344  }
 0x1d9   : > { %1143 = vmatpush.msra.mxu2 %v1127_v7  ;;  %v1080_v28 = vperm.slane %v1046_v23, 0  ;;  %v1081_v29 = vperm.slane %v1046_v23, 1  ;;  %v1125_v30 = vld [vmem:[%s1893_s3 + $0x8] sm:$0xff]  ;;  %v1124_v31 = vld [vmem:[%s1893_s3] sm:$0xff] }
 0x1da   : > { %v1151_v35 = vld [vmem:[%s1894_s4] sm:$0xff] }
 0x1db   : > { %1144 = vmatpush.msra.mxu2 %v1126_v8  ;;  %1172 = vmatpush.msra.mxu3 %v1151_v35  ;;  %v1152_v37 = vld [vmem:[%s1895_s5] sm:$0x1] }
 0x1dd   : > { %1145 = vmatpush.msra.mxu2 %v1125_v30 }
 0x1de   : > { %v1062_v57 = vld [vmem:[#allocation3 + $0x78] sm:$0xff]  ;;  %v1061_v59 = vld [vmem:[#allocation3 + $0x70] sm:$0xff]  ;;  %v1060_v61 = vld [vmem:[#allocation3 + $0x68] sm:$0xff] }
 0x1df   : > { %v1078_v58 = vld [vmem:[#allocation3 + $0xf8] sm:$0xff]  ;;  %1084 = vmatpush.msra.mxu0 %v1062_v57  ;;  %v1077_v60 = vld [vmem:[#allocation3 + $0xf0] sm:$0xff]  ;;  %v1076_v62 = vld [vmem:[#allocation3 + $0xe8] sm:$0xff]  ;;  %1146 = vmatpush.msra.mxu2 %v1124_v31 }
 0x1e0   : > { %1104 = vmatpush.msra.mxu1 %v1078_v58  ;;  %v1059_v63 = vld [vmem:[#allocation3 + $0x60] sm:$0xff]  ;;  %v1058_v1 = vld [vmem:[#allocation3 + $0x58] sm:$0xff]  ;;  %v1057_v3 = vld [vmem:[#allocation3 + $0x50] sm:$0xff] }
 0x1e1   : > { %1085 = vmatpush.msra.mxu0 %v1061_v59  ;;  %v1075_v0 = vld [vmem:[#allocation3 + $0xe0] sm:$0xff]  ;;  %v1074_v2 = vld [vmem:[#allocation3 + $0xd8] sm:$0xff]  ;;  %v1073_v4 = vld [vmem:[#allocation3 + $0xd0] sm:$0xff] }
 0x1e2   : > { %1105 = vmatpush.msra.mxu1 %v1077_v60  ;;  %v1056_v5 = vld [vmem:[#allocation3 + $0x48] sm:$0xff]  ;;  %v1055_v9 = vld [vmem:[#allocation3 + $0x40] sm:$0xff]  ;;  %v1054_v11 = vld [vmem:[#allocation3 + $0x38] sm:$0xff] }
 0x1e3   : > { %1086 = vmatpush.msra.mxu0 %v1060_v61  ;;  %v1072_v6 = vld [vmem:[#allocation3 + $0xc8] sm:$0xff]  ;;  %v1071_v10 = vld [vmem:[#allocation3 + $0xc0] sm:$0xff]  ;;  %v1070_v12 = vld [vmem:[#allocation3 + $0xb8] sm:$0xff] }
 0x1e4   : > { %1106 = vmatpush.msra.mxu1 %v1076_v62  ;;  %v1053_v13 = vld [vmem:[#allocation3 + $0x30] sm:$0xff]  ;;  %v1052_v15 = vld [vmem:[#allocation3 + $0x28] sm:$0xff]  ;;  %v1051_v17 = vld [vmem:[#allocation3 + $0x20] sm:$0xff] }
 0x1e5   : > { %1087 = vmatpush.msra.mxu0 %v1059_v63  ;;  %v1069_v14 = vld [vmem:[#allocation3 + $0xb0] sm:$0xff]  ;;  %v1068_v16 = vld [vmem:[#allocation3 + $0xa8] sm:$0xff]  ;;  %v1067_v18 = vld [vmem:[#allocation3 + $0xa0] sm:$0xff] }
 0x1e6   : > { %1107 = vmatpush.msra.mxu1 %v1075_v0  ;;  %v1050_v19 = vld [vmem:[#allocation3 + $0x18] sm:$0xff]  ;;  %v1049_v21 = vld [vmem:[#allocation3 + $0x10] sm:$0xff]  ;;  %v1048_v24 = vld [vmem:[#allocation3 + $0x8] sm:$0xff] }
 0x1e7   : > { %1088 = vmatpush.msra.mxu0 %v1058_v1  ;;  %v1066_v20 = vld [vmem:[#allocation3 + $0x98] sm:$0xff]  ;;  %v1065_v22 = vld [vmem:[#allocation3 + $0x90] sm:$0xff]  ;;  %v1064_v25 = vld [vmem:[#allocation3 + $0x88] sm:$0xff] }
 0x1e8   : > { %1108 = vmatpush.msra.mxu1 %v1074_v2  ;;  %v1047_v26 = vld [vmem:[#allocation3] sm:$0xff] }
 0x1e9   : > { %1089 = vmatpush.msra.mxu0 %v1057_v3  ;;  %v1063_v27 = vld [vmem:[#allocation3 + $0x80] sm:$0xff] }
 0x1ea   : > { %1109 = vmatpush.msra.mxu1 %v1073_v4 }
 0x1eb   : > { %1090 = vmatpush.msra.mxu0 %v1056_v5 }
 0x1ec   : > { %1110 = vmatpush.msra.mxu1 %v1072_v6 }
 0x1ed   : > { %1091 = vmatpush.msra.mxu0 %v1055_v9 }
 0x1ee   : > { %1111 = vmatpush.msra.mxu1 %v1071_v10 }
 0x1ef   : > { %1092 = vmatpush.msra.mxu0 %v1054_v11 }
 0x1f0   : > { %1112 = vmatpush.msra.mxu1 %v1070_v12 }
 0x1f1   : > { %1093 = vmatpush.msra.mxu0 %v1053_v13 }
 0x1f2   : > { %1113 = vmatpush.msra.mxu1 %v1069_v14 }
 0x1f3   : > { %1094 = vmatpush.msra.mxu0 %v1052_v15 }
 0x1f4   : > { %1114 = vmatpush.msra.mxu1 %v1068_v16 }
 0x1f5   : > { %1095 = vmatpush.msra.mxu0 %v1051_v17 }
 0x1f6   : > { %1115 = vmatpush.msra.mxu1 %v1067_v18 }
 0x1f7   : > { %1096 = vmatpush.msra.mxu0 %v1050_v19 }
 0x1f8   : > { %1116 = vmatpush.msra.mxu1 %v1066_v20 }
 0x1f9   : > { %1097 = vmatpush.msra.mxu0 %v1049_v21 }
 0x1fa   : > { %1117 = vmatpush.msra.mxu1 %v1065_v22 }
 0x1fb   : > { %1098 = vmatpush.msra.mxu0 %v1048_v24 }
 0x1fc   : > { %1118 = vmatpush.msra.mxu1 %v1064_v25 }
 0x1fd   : > { %1099 = vmatpush.msra.mxu0 %v1047_v26 }
 0x1fe   : > { %1119 = vmatpush.msra.mxu1 %v1063_v27  ;;  %1100 = vmatmul.f32.vlgmr.msra.gmra.mxu0 %v1080_v28 }
 0x1ff   : > { %1120 = vmatmul.f32.vlgmr.msra.gmra.mxu1 %v1081_v29 }
 0x27b   : > { %v1101_v32 = vpop.f32.mrf.mxu0 }
 0x27c   : > { %v1121_v33 = vpop.f32.mrf.mxu1 }
 0x27d   : > { %v1122_v34 = vadd.f32 %v1121_v33, %v1101_v32 }
 0x27f   : > { %1463 = vmatmul.msk.f32.vlgmr.msra.gmra.mxu2 %vm938_vm2, %v1122_v34 }
 0x302   : > { %v1148_v36 = vpop.f32.mrf.mxu2 }
 0x303   : > { %1464 = vmatmul.msk.f32.vlgmr.msra.gmra.mxu3 %vm1153_vm5, %v1148_v36 }
 0x386   : > { %v1174_v38 = vpop.f32.mrf.mxu3 }
 0x387   : > { %v1175_v39 = vadd.f32 %v1174_v38, %v1152_v37 }
 0x389   : > { %1178 = vst.msk [vmem:[#allocation5] sm:$0x1] %vm1177_vm6, %v1175_v39 }
 0x38a PF: > { %p1570_p6 = scmp.eq.s32.totalorder %s1665_s22, 1  ;;  %s1623_s25 = smov [#allocation5]  }
 0x38b   : > { %s1185_s26 = sshll.u32 %s1623_s25, 4  ;;  %s1187_s30 = sshll.u32 %s1896_s6, 4  ;;  %s1186_s26 = int_to_ptr.vmem [resolvable:$true] %s1185_s26  ;;  %s1188_s30 = int_to_ptr.hbm [resolvable:$true] %s1187_s30 }
 0x38c   : > { %1567 = dma.vmem_to_hbm [thread:$0]  (%p1570_p6), %s1186_s26, 16, %s1188_s30, [#allocation6]  }
 0x38d   : > { %1615 = dma.done.wait (%p1570_p6), [#allocation6], 16  }
 0x38e   : > { %1617 = vsyncadd (%p1570_p6), [#allocation6], 4294967280 }
 0x38f PF: > { %s17_s21 = sadd.s32 1, %s1620_s21  }
 0x390   : > { %p14_p7 = scmp.ge.s32.totalorder %s17_s21, 4  }
 0x392   :  { %16 = sbr.rel (!%p14_p7) target bundleno = 1 (0x1), region = 80 }
 0x397   :  { %1201 = vsyncpa [#allocation6], 1 }
 0x398   :  { %1203 = vsyncpa [#allocation6 + $0x1], 1 }

</bundles_post_ra>
